<compile_context>
chip_gen: v7x
topology: tpu7x:2x2x1
jax: 0.10.0
libtpu: 0.0.40
codegen_flags: <defaults>
</compile_context>

<pallas_src>
import functools

import jax
import jax.numpy as jnp
from jax.experimental import pallas as pl
from jax.experimental.pallas import tpu as pltpu


_LANE = 128                       # pad feature dim to a multiple of the 128-lane vreg
_ROW_TILE = 512                   # A row tile (output rows per grid step)
_MAX_COL_TILE = 2048              # A reduction tile upper bound (2 MiB bf16)
_VMEM_LIMIT = 48 * 1024 * 1024    # headroom under v7x's 64 MiB physical VMEM


def _round_up(x, m):
    return (x + m - 1) // m * m


def _pick_tiles(n):
    """Pick (n_pad, tm, tk) so tm | n_pad and tk | n_pad, with large MXU-friendly tiles."""
    if n <= _ROW_TILE:
        n_pad = _round_up(max(n, 8), 8)
        return n_pad, n_pad, n_pad
    n_pad = _round_up(n, _ROW_TILE)
    tm = _ROW_TILE
    tk = _ROW_TILE
    for cand in (_MAX_COL_TILE, _MAX_COL_TILE // 2):
        if n_pad % cand == 0:
            tk = cand
            break
    return n_pad, tm, tk


# --------------------- kernel 1: feature transform H0 = X @ W0 -------------------
def _xw_kernel(x_ref, w_ref, h_ref):
    h_ref[...] = jnp.dot(
        x_ref[...], w_ref[...], preferred_element_type=jnp.float32
    ).astype(h_ref.dtype)


def feature_transform(x_bf16, w_bf16, *, tm):
    """H = (X @ W) in bf16, tiled over rows of X, row axis megacore-parallel."""
    n, h = x_bf16.shape
    return pl.pallas_call(
        _xw_kernel,
        out_shape=jax.ShapeDtypeStruct((n, h), jnp.bfloat16),
        grid=(n // tm,),
        in_specs=[
            pl.BlockSpec((tm, h), lambda i: (i, 0)),   # X row tile
            pl.BlockSpec((h, h), lambda i: (0, 0)),    # W resident (constant block)
        ],
        out_specs=pl.BlockSpec((tm, h), lambda i: (i, 0)),
        compiler_params=pltpu.CompilerParams(
            dimension_semantics=("parallel",),
            vmem_limit_bytes=_VMEM_LIMIT,
        ),
    )(x_bf16, w_bf16)


# ---- kernel 2a: fused layer  H_next = ((A_norm @ H + b).bf16) @ W_next  (bf16) ----
def _agg_fused_kernel(a_ref, h_ref, b_ref, w_next_ref, o_ref, acc_ref):
    k = pl.program_id(1)

    @pl.when(k == 0)
    def _init():
        acc_ref[...] = jnp.zeros_like(acc_ref)

    tk = a_ref.shape[1]
    start = pl.multiple_of(k * tk, tk)
    h_blk = h_ref[pl.ds(start, tk), :]                 # slice of the resident H
    acc_ref[...] += jnp.dot(a_ref[...], h_blk, preferred_element_type=jnp.float32)

    @pl.when(k == pl.num_programs(1) - 1)
    def _finalize():
        # next layer's row-local feature transform rides in the MXU slack of this
        # HBM-bound kernel; output is already the next layer's H (bf16).
        x_next = (acc_ref[...] + b_ref[...]).astype(jnp.bfloat16)
        o_ref[...] = jnp.dot(
            x_next, w_next_ref[...], preferred_element_type=jnp.float32
        ).astype(o_ref.dtype)


def aggregate_fused(a_bf16, h_bf16, b_f32, w_next_bf16, *, tm, tk):
    n = a_bf16.shape[0]
    hdim = h_bf16.shape[1]
    return pl.pallas_call(
        _agg_fused_kernel,
        out_shape=jax.ShapeDtypeStruct((n, hdim), jnp.bfloat16),
        grid=(n // tm, n // tk),
        in_specs=[
            pl.BlockSpec((tm, tk), lambda m, k: (m, k)),      # A tiles (streamed)
            pl.BlockSpec((n, hdim), lambda m, k: (0, 0)),     # H whole, VMEM-resident
            pl.BlockSpec((1, hdim), lambda m, k: (0, 0)),     # bias resident
            pl.BlockSpec((hdim, hdim), lambda m, k: (0, 0)),  # W_{l+1} resident
        ],
        out_specs=pl.BlockSpec((tm, hdim), lambda m, k: (m, 0)),
        scratch_shapes=[pltpu.VMEM((tm, hdim), jnp.float32)],
        compiler_params=pltpu.CompilerParams(
            dimension_semantics=("parallel", "arbitrary"),
            vmem_limit_bytes=_VMEM_LIMIT,
        ),
    )(a_bf16, h_bf16, b_f32, w_next_bf16)


# ------------- kernel 2b: last layer  out = A_norm @ H + b  (f32 output) ----------
def _agg_last_kernel(a_ref, h_ref, b_ref, o_ref):
    k = pl.program_id(1)

    @pl.when(k == 0)
    def _init():
        o_ref[...] = jnp.zeros_like(o_ref)

    tk = a_ref.shape[1]
    start = pl.multiple_of(k * tk, tk)
    h_blk = h_ref[pl.ds(start, tk), :]
    # accumulate directly into the resident f32 output block (no scratch needed)
    o_ref[...] += jnp.dot(a_ref[...], h_blk, preferred_element_type=jnp.float32)

    @pl.when(k == pl.num_programs(1) - 1)
    def _finalize():
        o_ref[...] += b_ref[...]


def aggregate_last(a_bf16, h_bf16, b_f32, *, tm, tk):
    n = a_bf16.shape[0]
    hdim = h_bf16.shape[1]
    return pl.pallas_call(
        _agg_last_kernel,
        out_shape=jax.ShapeDtypeStruct((n, hdim), jnp.float32),
        grid=(n // tm, n // tk),
        in_specs=[
            pl.BlockSpec((tm, tk), lambda m, k: (m, k)),     # A tiles (streamed)
            pl.BlockSpec((n, hdim), lambda m, k: (0, 0)),    # H whole, VMEM-resident
            pl.BlockSpec((1, hdim), lambda m, k: (0, 0)),    # bias resident
        ],
        out_specs=pl.BlockSpec((tm, hdim), lambda m, k: (m, 0)),
        compiler_params=pltpu.CompilerParams(
            dimension_semantics=("parallel", "arbitrary"),
            vmem_limit_bytes=_VMEM_LIMIT,
        ),
    )(a_bf16, h_bf16, b_f32)


# ------------------------------- plain-JAX glue ----------------------------------
def build_normalized_adjacency_padded(edge_index, num_nodes, n_pad):
    """D^{-1/2} A D^{-1/2} with A[dst, src] = 1, no self-loops, built directly into
    a padded (n_pad, n_pad) buffer (f32 scatter-add, single cast to bf16)."""
    src = edge_index[0]
    dst = edge_index[1]
    ones = jnp.ones(src.shape[0], dtype=jnp.float32)
    deg = jnp.zeros((num_nodes,), dtype=jnp.float32).at[dst].add(ones)
    deg_inv_sqrt = jnp.where(deg > 0, jax.lax.rsqrt(jnp.maximum(deg, 1e-12)), 0.0)
    norm = deg_inv_sqrt[src] * deg_inv_sqrt[dst]
    a = jnp.zeros((n_pad, n_pad), dtype=jnp.float32).at[dst, src].add(norm)
    return a.astype(jnp.bfloat16)


class GraphEncoderPallas:
    """Stack of `layers` GCNConv(hidden_dim, hidden_dim) layers (no activation)."""

    def __init__(self, layers, hidden_dim, dropout, key):
        del dropout  # declared in the torch module but unused in forward
        self.layers = layers
        self.hidden_dim = hidden_dim
        self.weights = []
        self.biases = []
        for i in range(layers):
            k = jax.random.fold_in(key, i)
            w = (jax.random.normal(k, (hidden_dim, hidden_dim), jnp.float32)
                 * (1.0 / jnp.sqrt(hidden_dim)))
            b = jnp.zeros((hidden_dim,), jnp.float32)
            self.weights.append(w)
            self.biases.append(b)

    @functools.partial(jax.jit, static_argnums=0)
    def __call__(self, x, edge_index):
        n, h = x.shape
        h_pad = _round_up(h, _LANE)
        n_pad, tm, tk = _pick_tiles(n)

        # Padded A rows/cols are zero -> padded nodes never influence real rows,
        # even though fused layers leave b @ W in the padded H rows.
        a_pad = build_normalized_adjacency_padded(edge_index, n, n_pad)
        x_pad = jnp.zeros((n_pad, h_pad), jnp.bfloat16).at[:n, :h].set(
            x.astype(jnp.bfloat16))

        w_pads = []
        b_pads = []
        for w, b in zip(self.weights, self.biases):
            w_pads.append(jnp.zeros((h_pad, h_pad), jnp.bfloat16).at[:h, :h].set(
                w.astype(jnp.bfloat16)))
            b_pads.append(jnp.zeros((1, h_pad), jnp.float32).at[0, :h].set(b))

        # layer 0 feature transform; each fused layer then emits the NEXT layer's H.
        h_feat = feature_transform(x_pad, w_pads[0], tm=tm)
        for l in range(self.layers - 1):
            h_feat = aggregate_fused(a_pad, h_feat, b_pads[l], w_pads[l + 1],
                                     tm=tm, tk=tk)
        out = aggregate_last(a_pad, h_feat, b_pads[-1], tm=tm, tk=tk)

        return out[:n, :h]


def _reference_forward(a_bf16, x, weights, biases):
    """Pure-JAX reference with the same bf16-input / f32-accumulate math."""
    for w, b in zip(weights, biases):
        h = jnp.dot(x.astype(jnp.bfloat16), w.astype(jnp.bfloat16),
                    preferred_element_type=jnp.float32).astype(jnp.bfloat16)
        x = jnp.dot(a_bf16, h, preferred_element_type=jnp.float32) + b
    return x


def _run_case(num_nodes, hidden_dim, num_layers, num_edges, seed):
    key = jax.random.PRNGKey(seed)
    k_x, k_e, k_p = jax.random.split(key, 3)
    x = jax.random.normal(k_x, (num_nodes, hidden_dim), jnp.float32)
    edge_index = jax.random.randint(k_e, (2, num_edges), 0, num_nodes, jnp.int32)

    model = GraphEncoderPallas(num_layers, hidden_dim, dropout=0.1, key=k_p)
    out = jax.block_until_ready(model(x, edge_index))

    a_ref = build_normalized_adjacency_padded(edge_index, num_nodes, num_nodes)
    ref = _reference_forward(a_ref, x, model.weights, model.biases)
    assert out.shape == (num_nodes, hidden_dim)
    assert jnp.allclose(out, ref, atol=2e-2, rtol=2e-2), (
        f"max abs err {jnp.max(jnp.abs(out - ref))}")


if __name__ == "__main__":
    # small case (module-typical shapes; single-tile path)
    _run_case(num_nodes=8, hidden_dim=32, num_layers=2, num_edges=16, seed=0)
    # larger case exercising padding + the 512x1024 multi-tile grid and layer fusion
    _run_case(num_nodes=600, hidden_dim=64, num_layers=3, num_edges=2000, seed=1)
    print("KERNEL_OK")
</pallas_src>

<mosaic_0001>
module attributes {stable_mosaic.version = 11 : i64} {
  func.func private @main(%arg0: i32) attributes {dimension_semantics = [#tpu.dimension_semantics<core_parallel>], iteration_bounds = array<i64: 2>, tpu.core_type = #tpu.core_type<sc_scalar_subcore>, window_params = []} {
    return
  }
}

module attributes {stable_mosaic.version = 11 : i64} {
  func.func private @main(%arg0: i32) attributes {dimension_semantics = [#tpu.dimension_semantics<core_parallel>], iteration_bounds = array<i64: 2>, tpu.core_type = #tpu.core_type<sc_scalar_subcore>, window_params = []} {
    return
  }
}

module attributes {stable_mosaic.version = 11 : i64} {
  func.func @_xw_kernel(%arg0: i32, %arg1: memref<8x128xbf16, #tpu.memory_space<vmem>>, %arg2: memref<128x128xbf16, #tpu.memory_space<vmem>>, %arg3: memref<8x128xbf16, #tpu.memory_space<vmem>>) attributes {dimension_semantics = [#tpu.dimension_semantics<parallel>], iteration_bounds = array<i64: 1>, scalar_prefetch = 0 : i64, scratch_operands = 0 : i64, tpu.core_type = #tpu.core_type<tc>, window_params = [{transform_indices = @transform_0, window_bounds = array<i64: 8, 128>}, {pipeline_mode = #tpu.pipeline_mode<synchronous>, transform_indices = @transform_1, window_bounds = array<i64: 128, 128>}, {transform_indices = @transform_2, window_bounds = array<i64: 8, 128>}]} {
    %c0 = arith.constant 0 : index
    %c0_0 = arith.constant 0 : index
    %0 = vector.load %arg1[%c0, %c0_0] : memref<8x128xbf16, #tpu.memory_space<vmem>>, vector<8x128xbf16>
    %c0_1 = arith.constant 0 : index
    %c0_2 = arith.constant 0 : index
    %1 = vector.load %arg2[%c0_1, %c0_2] : memref<128x128xbf16, #tpu.memory_space<vmem>>, vector<128x128xbf16>
    %cst = arith.constant dense<0.000000e+00> : vector<8x128xf32>
    %2 = tpu.matmul %0, %1, %cst {dimension_numbers = #tpu.dot_dimension_numbers<[1], [0], [0], [1], [0, 0, 1, 1], [], []>} : vector<8x128xbf16>, vector<128x128xbf16>, vector<8x128xf32> -> vector<8x128xf32>
    %3 = arith.truncf %2 : vector<8x128xf32> to vector<8x128xbf16>
    %c0_3 = arith.constant 0 : index
    %c0_4 = arith.constant 0 : index
    %4 = vector.load %arg3[%c0_3, %c0_4] : memref<8x128xbf16, #tpu.memory_space<vmem>>, vector<8x128xbf16>
    tpu.vector_store %arg3[%c0_3, %c0_4], %3 {strides = array<i32>} : memref<8x128xbf16, #tpu.memory_space<vmem>>, vector<8x128xbf16>,
    return
  }
  func.func @transform_0(%arg0: i32) -> (i32, i32) {
    %c0_i32 = arith.constant 0 : i32
    %c0_i32_0 = arith.constant 0 : i32
    return %arg0, %c0_i32 : i32, i32
  }
  func.func @transform_1(%arg0: i32) -> (i32, i32) {
    %c0_i32 = arith.constant 0 : i32
    %c0_i32_0 = arith.constant 0 : i32
    %c0_i32_1 = arith.constant 0 : i32
    return %c0_i32, %c0_i32_0 : i32, i32
  }
  func.func @transform_2(%arg0: i32) -> (i32, i32) {
    %c0_i32 = arith.constant 0 : i32
    %c0_i32_0 = arith.constant 0 : i32
    return %arg0, %c0_i32 : i32, i32
  }
}

module attributes {stable_mosaic.version = 11 : i64} {
  func.func @_agg_fused_kernel(%arg0: i32, %arg1: i32, %arg2: memref<8x8xbf16, #tpu.memory_space<vmem>>, %arg3: memref<8x128xbf16, #tpu.memory_space<vmem>>, %arg4: memref<1x128xf32, #tpu.memory_space<vmem>>, %arg5: memref<128x128xbf16, #tpu.memory_space<vmem>>, %arg6: memref<8x128xbf16, #tpu.memory_space<vmem>>, %arg7: memref<8x128xf32, #tpu.memory_space<vmem>>) attributes {dimension_semantics = [#tpu.dimension_semantics<parallel>, #tpu.dimension_semantics<arbitrary>], iteration_bounds = array<i64: 1, 1>, scalar_prefetch = 0 : i64, scratch_operands = 1 : i64, tpu.core_type = #tpu.core_type<tc>, window_params = [{transform_indices = @transform_0, window_bounds = array<i64: 8, 8>}, {pipeline_mode = #tpu.pipeline_mode<synchronous>, transform_indices = @transform_1, window_bounds = array<i64: 8, 128>}, {pipeline_mode = #tpu.pipeline_mode<synchronous>, transform_indices = @transform_2, window_bounds = array<i64: 1, 128>}, {pipeline_mode = #tpu.pipeline_mode<synchronous>, transform_indices = @transform_3, window_bounds = array<i64: 128, 128>}, {transform_indices = @transform_4, window_bounds = array<i64: 8, 128>}]} {
    %c0_i32 = arith.constant 0 : i32
    %0 = arith.cmpi eq, %arg1, %c0_i32 : i32
    %1 = arith.extui %0 : i1 to i32
    %c0_i32_0 = arith.constant 0 : i32
    %2 = arith.cmpi ne, %1, %c0_i32_0 : i32
    scf.if %2 {
      %cst_9 = arith.constant 0.000000e+00 : f32
      %15 = vector.broadcast %cst_9 : f32 to vector<8x128xf32>
      %c0_10 = arith.constant 0 : index
      %c0_11 = arith.constant 0 : index
      %16 = vector.load %arg7[%c0_10, %c0_11] : memref<8x128xf32, #tpu.memory_space<vmem>>, vector<8x128xf32>
      tpu.vector_store %arg7[%c0_10, %c0_11], %15 {strides = array<i32>} : memref<8x128xf32, #tpu.memory_space<vmem>>, vector<8x128xf32>,
    } else {
    }
    %c8_i32 = arith.constant 8 : i32
    %3 = arith.muli %arg1, %c8_i32 : i32
    %4 = tpu.assume_multiple %3, 8 : i32
    %5 = arith.index_cast %4 : i32 to index
    %c0 = arith.constant 0 : index
    %6 = vector.load %arg3[%5, %c0] : memref<8x128xbf16, #tpu.memory_space<vmem>>, vector<8x128xbf16>
    %c0_1 = arith.constant 0 : index
    %c0_2 = arith.constant 0 : index
    %7 = vector.load %arg7[%c0_1, %c0_2] : memref<8x128xf32, #tpu.memory_space<vmem>>, vector<8x128xf32>
    %c0_3 = arith.constant 0 : index
    %c0_4 = arith.constant 0 : index
    %8 = vector.load %arg2[%c0_3, %c0_4] : memref<8x8xbf16, #tpu.memory_space<vmem>>, vector<8x8xbf16>
    %cst = arith.constant dense<0.000000e+00> : vector<8x128xf32>
    %9 = tpu.matmul %8, %6, %cst {dimension_numbers = #tpu.dot_dimension_numbers<[1], [0], [0], [1], [0, 0, 1, 1], [], []>} : vector<8x8xbf16>, vector<8x128xbf16>, vector<8x128xf32> -> vector<8x128xf32>
    %10 = arith.addf %7, %9 : vector<8x128xf32>
    %c0_5 = arith.constant 0 : index
    %c0_6 = arith.constant 0 : index
    %11 = vector.load %arg7[%c0_5, %c0_6] : memref<8x128xf32, #tpu.memory_space<vmem>>, vector<8x128xf32>
    tpu.vector_store %arg7[%c0_5, %c0_6], %10 {strides = array<i32>} : memref<8x128xf32, #tpu.memory_space<vmem>>, vector<8x128xf32>,
    %c0_i32_7 = arith.constant 0 : i32
    %12 = arith.cmpi eq, %arg1, %c0_i32_7 : i32
    %13 = arith.extui %12 : i1 to i32
    %c0_i32_8 = arith.constant 0 : i32
    %14 = arith.cmpi ne, %13, %c0_i32_8 : i32
    scf.if %14 {
      %c0_9 = arith.constant 0 : index
      %c0_10 = arith.constant 0 : index
      %15 = vector.load %arg7[%c0_9, %c0_10] : memref<8x128xf32, #tpu.memory_space<vmem>>, vector<8x128xf32>
      %c0_11 = arith.constant 0 : index
      %c0_12 = arith.constant 0 : index
      %16 = vector.load %arg4[%c0_11, %c0_12] : memref<1x128xf32, #tpu.memory_space<vmem>>, vector<1x128xf32>
      %17 = vector.broadcast %16 : vector<1x128xf32> to vector<8x128xf32>
      %18 = arith.addf %15, %17 : vector<8x128xf32>
      %19 = arith.truncf %18 : vector<8x128xf32> to vector<8x128xbf16>
      %c0_13 = arith.constant 0 : index
      %c0_14 = arith.constant 0 : index
      %20 = vector.load %arg5[%c0_13, %c0_14] : memref<128x128xbf16, #tpu.memory_space<vmem>>, vector<128x128xbf16>
      %cst_15 = arith.constant dense<0.000000e+00> : vector<8x128xf32>
      %21 = tpu.matmul %19, %20, %cst_15 {dimension_numbers = #tpu.dot_dimension_numbers<[1], [0], [0], [1], [0, 0, 1, 1], [], []>} : vector<8x128xbf16>, vector<128x128xbf16>, vector<8x128xf32> -> vector<8x128xf32>
      %22 = arith.truncf %21 : vector<8x128xf32> to vector<8x128xbf16>
      %c0_16 = arith.constant 0 : index
      %c0_17 = arith.constant 0 : index
      %23 = vector.load %arg6[%c0_16, %c0_17] : memref<8x128xbf16, #tpu.memory_space<vmem>>, vector<8x128xbf16>
      tpu.vector_store %arg6[%c0_16, %c0_17], %22 {strides = array<i32>} : memref<8x128xbf16, #tpu.memory_space<vmem>>, vector<8x128xbf16>,
    } else {
    }
    return
  }
  func.func @transform_0(%arg0: i32, %arg1: i32) -> (i32, i32) {
    %c0_i32 = arith.constant 0 : i32
    return %arg0, %arg1 : i32, i32
  }
  func.func @transform_1(%arg0: i32, %arg1: i32) -> (i32, i32) {
    %c0_i32 = arith.constant 0 : i32
    %c0_i32_0 = arith.constant 0 : i32
    %c0_i32_1 = arith.constant 0 : i32
    return %c0_i32, %c0_i32_0 : i32, i32
  }
  func.func @transform_2(%arg0: i32, %arg1: i32) -> (i32, i32) {
    %c0_i32 = arith.constant 0 : i32
    %c0_i32_0 = arith.constant 0 : i32
    %c0_i32_1 = arith.constant 0 : i32
    return %c0_i32, %c0_i32_0 : i32, i32
  }
  func.func @transform_3(%arg0: i32, %arg1: i32) -> (i32, i32) {
    %c0_i32 = arith.constant 0 : i32
    %c0_i32_0 = arith.constant 0 : i32
    %c0_i32_1 = arith.constant 0 : i32
    return %c0_i32, %c0_i32_0 : i32, i32
  }
  func.func @transform_4(%arg0: i32, %arg1: i32) -> (i32, i32) {
    %c0_i32 = arith.constant 0 : i32
    %c0_i32_0 = arith.constant 0 : i32
    return %arg0, %c0_i32 : i32, i32
  }
}

module attributes {stable_mosaic.version = 11 : i64} {
  func.func @_agg_last_kernel(%arg0: i32, %arg1: i32, %arg2: memref<8x8xbf16, #tpu.memory_space<vmem>>, %arg3: memref<8x128xbf16, #tpu.memory_space<vmem>>, %arg4: memref<1x128xf32, #tpu.memory_space<vmem>>, %arg5: memref<8x128xf32, #tpu.memory_space<vmem>>) attributes {dimension_semantics = [#tpu.dimension_semantics<parallel>, #tpu.dimension_semantics<arbitrary>], iteration_bounds = array<i64: 1, 1>, scalar_prefetch = 0 : i64, scratch_operands = 0 : i64, tpu.core_type = #tpu.core_type<tc>, window_params = [{transform_indices = @transform_0, window_bounds = array<i64: 8, 8>}, {pipeline_mode = #tpu.pipeline_mode<synchronous>, transform_indices = @transform_1, window_bounds = array<i64: 8, 128>}, {pipeline_mode = #tpu.pipeline_mode<synchronous>, transform_indices = @transform_2, window_bounds = array<i64: 1, 128>}, {transform_indices = @transform_3, window_bounds = array<i64: 8, 128>}]} {
    %c0_i32 = arith.constant 0 : i32
    %0 = arith.cmpi eq, %arg1, %c0_i32 : i32
    %1 = arith.extui %0 : i1 to i32
    %c0_i32_0 = arith.constant 0 : i32
    %2 = arith.cmpi ne, %1, %c0_i32_0 : i32
    scf.if %2 {
      %cst_9 = arith.constant 0.000000e+00 : f32
      %15 = vector.broadcast %cst_9 : f32 to vector<8x128xf32>
      %c0_10 = arith.constant 0 : index
      %c0_11 = arith.constant 0 : index
      %16 = vector.load %arg5[%c0_10, %c0_11] : memref<8x128xf32, #tpu.memory_space<vmem>>, vector<8x128xf32>
      tpu.vector_store %arg5[%c0_10, %c0_11], %15 {strides = array<i32>} : memref<8x128xf32, #tpu.memory_space<vmem>>, vector<8x128xf32>,
    } else {
    }
    %c8_i32 = arith.constant 8 : i32
    %3 = arith.muli %arg1, %c8_i32 : i32
    %4 = tpu.assume_multiple %3, 8 : i32
    %5 = arith.index_cast %4 : i32 to index
    %c0 = arith.constant 0 : index
    %6 = vector.load %arg3[%5, %c0] : memref<8x128xbf16, #tpu.memory_space<vmem>>, vector<8x128xbf16>
    %c0_1 = arith.constant 0 : index
    %c0_2 = arith.constant 0 : index
    %7 = vector.load %arg5[%c0_1, %c0_2] : memref<8x128xf32, #tpu.memory_space<vmem>>, vector<8x128xf32>
    %c0_3 = arith.constant 0 : index
    %c0_4 = arith.constant 0 : index
    %8 = vector.load %arg2[%c0_3, %c0_4] : memref<8x8xbf16, #tpu.memory_space<vmem>>, vector<8x8xbf16>
    %cst = arith.constant dense<0.000000e+00> : vector<8x128xf32>
    %9 = tpu.matmul %8, %6, %cst {dimension_numbers = #tpu.dot_dimension_numbers<[1], [0], [0], [1], [0, 0, 1, 1], [], []>} : vector<8x8xbf16>, vector<8x128xbf16>, vector<8x128xf32> -> vector<8x128xf32>
    %10 = arith.addf %7, %9 : vector<8x128xf32>
    %c0_5 = arith.constant 0 : index
    %c0_6 = arith.constant 0 : index
    %11 = vector.load %arg5[%c0_5, %c0_6] : memref<8x128xf32, #tpu.memory_space<vmem>>, vector<8x128xf32>
    tpu.vector_store %arg5[%c0_5, %c0_6], %10 {strides = array<i32>} : memref<8x128xf32, #tpu.memory_space<vmem>>, vector<8x128xf32>,
    %c0_i32_7 = arith.constant 0 : i32
    %12 = arith.cmpi eq, %arg1, %c0_i32_7 : i32
    %13 = arith.extui %12 : i1 to i32
    %c0_i32_8 = arith.constant 0 : i32
    %14 = arith.cmpi ne, %13, %c0_i32_8 : i32
    scf.if %14 {
      %c0_9 = arith.constant 0 : index
      %c0_10 = arith.constant 0 : index
      %15 = vector.load %arg5[%c0_9, %c0_10] : memref<8x128xf32, #tpu.memory_space<vmem>>, vector<8x128xf32>
      %c0_11 = arith.constant 0 : index
      %c0_12 = arith.constant 0 : index
      %16 = vector.load %arg4[%c0_11, %c0_12] : memref<1x128xf32, #tpu.memory_space<vmem>>, vector<1x128xf32>
      %17 = vector.broadcast %16 : vector<1x128xf32> to vector<8x128xf32>
      %18 = arith.addf %15, %17 : vector<8x128xf32>
      %c0_13 = arith.constant 0 : index
      %c0_14 = arith.constant 0 : index
      %19 = vector.load %arg5[%c0_13, %c0_14] : memref<8x128xf32, #tpu.memory_space<vmem>>, vector<8x128xf32>
      tpu.vector_store %arg5[%c0_13, %c0_14], %18 {strides = array<i32>} : memref<8x128xf32, #tpu.memory_space<vmem>>, vector<8x128xf32>,
    } else {
    }
    return
  }
  func.func @transform_0(%arg0: i32, %arg1: i32) -> (i32, i32) {
    %c0_i32 = arith.constant 0 : i32
    return %arg0, %arg1 : i32, i32
  }
  func.func @transform_1(%arg0: i32, %arg1: i32) -> (i32, i32) {
    %c0_i32 = arith.constant 0 : i32
    %c0_i32_0 = arith.constant 0 : i32
    %c0_i32_1 = arith.constant 0 : i32
    return %c0_i32, %c0_i32_0 : i32, i32
  }
  func.func @transform_2(%arg0: i32, %arg1: i32) -> (i32, i32) {
    %c0_i32 = arith.constant 0 : i32
    %c0_i32_0 = arith.constant 0 : i32
    %c0_i32_1 = arith.constant 0 : i32
    return %c0_i32, %c0_i32_0 : i32, i32
  }
  func.func @transform_3(%arg0: i32, %arg1: i32) -> (i32, i32) {
    %c0_i32 = arith.constant 0 : i32
    %c0_i32_0 = arith.constant 0 : i32
    return %arg0, %c0_i32 : i32, i32
  }
}

</mosaic_0001>

<bundles_post_ra>
// kernel: mul.1
= control target key start
LH: loop header
LB: loop body
LE: loop exit
PB: predicated region body
PF: predicated region fallthrough
CT: control target
= control target key end

     0   :  { %s34_s0 = inlined_call_operand.vmem [shape: f32[16], index: 0, kind: input, shape index: {}]   ;;  %s35_s1 = inlined_call_operand.vmem [shape: f32[16], index: 1, kind: input, shape index: {}]   ;;  %s36_s2 = inlined_call_operand.vmem [shape: f32[16], index: 2, kind: output, shape index: {}]  }
   0x1   :  { %v3_v0 = vld [vmem:[%s34_s0] sm:$0x1] }
   0x2   :  { %v4_v1 = vld [vmem:[%s35_s1] sm:$0x1] }
   0x3   :  { %v7_v2 = vmul.f32 %v4_v1, %v3_v0 }
   0x5   :  { %9 = vst [vmem:[%s36_s2] sm:$0x1] %v7_v2 }

// kernel: a_call__.3
= control target key start
LH: loop header
LB: loop body
LE: loop exit
PB: predicated region body
PF: predicated region fallthrough
CT: control target
= control target key end

     0   :  { %v170_v0 = vmov 0.0   ;;  %vm171_vm0 = vmmov 0   ;;  %s217_s1 = inlined_call_operand.vmem [shape: bf16[128,128], index: 1, kind: input, shape index: {}]   ;;  %s218_s0 = inlined_call_operand.vmem [shape: bf16[8,128], index: 0, kind: input, shape index: {}]   ;;  %s219_s2 = inlined_call_operand.vmem [shape: bf16[8,128], index: 2, kind: output, shape index: {}]  }
   0x1   :  { %140 = vmatprep.subr.bf16.mxu0 %v170_v0  ;;  %v162_v1 = vld [vmem:[%s217_s1] sm:$0xff]   ;;  %156 = vmatprep.mubr.msk.bf16.mxu0 %vm171_vm0, %v170_v0  ;;  %v163_v2 = vld [vmem:[%s217_s1 + $0x8] sm:$0xff]   ;;  %v164_v3 = vld [vmem:[%s217_s1 + $0x10] sm:$0xff]  }
   0x2   :  { %141 = vmatpush3.bf16.msra.mxu0 %v162_v1  ;;  %v165_v4 = vld [vmem:[%s217_s1 + $0x18] sm:$0xff]   ;;  %v166_v5 = vld [vmem:[%s217_s1 + $0x20] sm:$0xff]   ;;  %v167_v6 = vld [vmem:[%s217_s1 + $0x28] sm:$0xff]  }
   0x3   :  { %142 = vmatprep.subr.bf16.mxu0 %v170_v0  ;;  %v168_v7 = vld [vmem:[%s217_s1 + $0x30] sm:$0xff]   ;;  %v169_v8 = vld [vmem:[%s217_s1 + $0x38] sm:$0xff]   ;;  %v12_v9 = vld [vmem:[%s218_s0] sm:$0xf] }
   0x6   :  { %143 = vmatpush3.bf16.msra.mxu0 %v163_v2 }
   0x7   :  { %144 = vmatprep.subr.bf16.mxu0 %v170_v0 }
   0xa   :  { %145 = vmatpush3.bf16.msra.mxu0 %v164_v3 }
   0xb   :  { %146 = vmatprep.subr.bf16.mxu0 %v170_v0 }
   0xe   :  { %147 = vmatpush3.bf16.msra.mxu0 %v165_v4 }
   0xf   :  { %148 = vmatprep.subr.bf16.mxu0 %v170_v0 }
  0x12   :  { %149 = vmatpush3.bf16.msra.mxu0 %v166_v5 }
  0x13   :  { %150 = vmatprep.subr.bf16.mxu0 %v170_v0 }
  0x16   :  { %151 = vmatpush3.bf16.msra.mxu0 %v167_v6 }
  0x17   :  { %152 = vmatprep.subr.bf16.mxu0 %v170_v0 }
  0x1a   :  { %153 = vmatpush3.bf16.msra.mxu0 %v168_v7 }
  0x1b   :  { %154 = vmatprep.subr.bf16.mxu0 %v170_v0 }
  0x1e   :  { %155 = vmatpush3.bf16.msra.mxu0 %v169_v8 }
  0x21   :  { %157 = vmatmul.mubr.bf16.vlgmr.msra.gmra.mrb[0].mxu0 %v12_v9 }
  0xf4   :  { %v111_v10 = vpop.f32.mrb[0].mxu0 }
  0xf5   :  { %v117_v11 = vpack.c.bf16 %v111_v10, %v111_v10  ;;  %v158_v12 = vpop.f32.mrb[1].mxu0 }
  0xf6   :  { %v114_v13 = vpop.f32.mrb[2].mxu0 }
  0xf7   :  { %118 = vst [vmem:[%s219_s2] sm:$0xf] %v117_v11  ;;  %v159_v14 = vpop.f32.mrb[3].mxu0 }

// kernel: a_call__.5
= control target key start
LH: loop header
LB: loop body
LE: loop exit
PB: predicated region body
PF: predicated region fallthrough
CT: control target
= control target key end

     0   :  { %vm33_vm0 = vcmask 1043456   ;;  %v145_v1 = vmov 0.0   ;;  %vm146_vm1 = vmmov 0   ;;  %s189_s0 = inlined_call_operand.vmem [shape: bf16[8,8], index: 0, kind: input, shape index: {}]   ;;  %s190_s1 = inlined_call_operand.vmem [shape: bf16[8,128], index: 1, kind: input, shape index: {}]   ;;  %s191_s2 = inlined_call_operand.vmem [shape: f32[1,128], index: 2, kind: input, shape index: {}]   ;;  %s192_s3 = inlined_call_operand.hbm [shape: f32[8,128], index: 3, kind: output, shape index: {}]  }
   0x1   :  { %v26_v0 = vld [vmem:[%s190_s1] sm:$0xf]  ;;  %112 = vmatprep.subr.bf16.mxu0 %v145_v1  ;;  %114 = vmatprep.mubr.msk.bf16.mxu0 %vm146_vm1, %v145_v1 }
   0x2   :  { %v35_v2 = vsel %vm33_vm0, %v26_v0, 0 }
   0x3   :  { %8 = vsyncpa [#allocation3], 0  ;;  %113 = vmatpush3.bf16.msra.mxu0 %v35_v2  ;;  %v28_v3 = vld [vmem:[%s189_s0] sm:$0xf]  ;;  %vm29_vm2 = vcmask 64512   ;;  %s147_s1 = smov [#allocation2]  }
   0x4   :  { %v109_v5 = vld [vmem:[%s191_s2] ss:$0 sm:$0xff]  ;;  %s98_s18 = sshll.u32 %s147_s1, 4  ;;  %s99_s18 = int_to_ptr.vmem [resolvable:$true] %s98_s18 }
   0x5   :  { %s121_s19 = scalar_lea.vmem %s99_s18, 128  ;;  %p126_p1 = scmp.lt.s32.totalorder %s99_s18, %s99_s18 }
   0x6   :  { %115 = vmatmul.mubr.msk.bf16.vlgmr.msra.gmra.mrb[0].mxu0 %vm29_vm2, %v28_v3  ;;  %p122_p0 = scmp.ne.s32.totalorder %s99_s18, %s121_s19  ;;  %p127_p2 = scmp.lt.s32.totalorder %s121_s19, %s121_s19 }
   0x8   :  { %p128_p3 = por %p127_p2, %p126_p1 }
   0xa   :  { %p129_p4 = pnand %p128_p3, %p122_p0 }
  0xd9   :  { %v71_v4 = vpop.f32.mrb[0].mxu0 }
  0xda   :  { %v116_v6 = vpop.f32.mrb[1].mxu0  ;;  %v90_v9 = vadd.f32 %v109_v5, %v71_v4 }
  0xdb   :  { %v74_v7 = vpop.f32.mrb[2].mxu0 }
  0xdc   :  { %v117_v8 = vpop.f32.mrb[3].mxu0  ;;  %91 = vst [vmem:[#allocation2] sm:$0xff] %v90_v9 }
  0xdd   :  { %132 = shalt.err (!%p129_p4)
}
  0xde   :  { %s133_s21 = scalar_lea.hbm %s192_s3, 128 }
  0xdf   :  { %p134_p5 = scmp.ne.s32.totalorder %s192_s3, %s133_s21  ;;  %p137_p6 = scmp.lt.u32.totalorder %s133_s21, %s192_s3 }
  0xe1   :  { %p139_p7 = pnand %p137_p6, %p134_p5 }
  0xe3   :  { %142 = shalt.err (!%p139_p7)
}
  0xe4   :  { %101 = dma.vmem_to_hbm [thread:$0]  %s99_s18, 128, %s192_s3, [#allocation3]  }
  0xe5   :  { %143 = dma.done.wait [#allocation3], 128  }
  0xe6   :  { %144 = vsyncadd [#allocation3], 4294967168 }
  0xe7   :  { %105 = vsyncpa [#allocation3], 1 }

// kernel: a_call__.4
= control target key start
LH: loop header
LB: loop body
LE: loop exit
PB: predicated region body
PF: predicated region fallthrough
CT: control target
= control target key end

     0   :  { %vm35_vm0 = vcmask 1043456   ;;  %v263_v0 = vmov 0.0   ;;  %vm264_vm1 = vmmov 0   ;;  %vm31_vm2 = vcmask 64512   ;;  %s326_s1 = inlined_call_operand.vmem [shape: bf16[8,128], index: 1, kind: input, shape index: {}]   ;;  %s327_s0 = inlined_call_operand.vmem [shape: bf16[8,8], index: 0, kind: input, shape index: {}]   ;;  %s328_s3 = inlined_call_operand.vmem [shape: bf16[128,128], index: 3, kind: input, shape index: {}]   ;;  %s329_s2 = inlined_call_operand.vmem [shape: f32[1,128], index: 2, kind: input, shape index: {}]   ;;  %s330_s4 = inlined_call_operand.vmem [shape: bf16[8,128], index: 4, kind: output, shape index: {}]  }
   0x1   :  { %227 = vmatprep.subr.bf16.mxu0 %v263_v0  ;;  %v28_v1 = vld [vmem:[%s326_s1] sm:$0xf]  ;;  %229 = vmatprep.mubr.msk.bf16.mxu0 %vm264_vm1, %v263_v0  ;;  %v256_v5 = vld [vmem:[%s328_s3 + $0x8] sm:$0xff]   ;;  %v257_v6 = vld [vmem:[%s328_s3 + $0x10] sm:$0xff]  }
   0x2   :  { %v37_v2 = vsel %vm35_vm0, %v28_v1, 0  ;;  %233 = vmatprep.subr.bf16.mxu1 %v263_v0  ;;  %v255_v3 = vld [vmem:[%s328_s3] sm:$0xff]   ;;  %249 = vmatprep.mubr.msk.bf16.mxu1 %vm264_vm1, %v263_v0  ;;  %v258_v7 = vld [vmem:[%s328_s3 + $0x18] sm:$0xff]   ;;  %v260_v9 = vld [vmem:[%s328_s3 + $0x28] sm:$0xff]  }
   0x3   :  { %228 = vmatpush3.bf16.msra.mxu0 %v37_v2  ;;  %v30_v4 = vld [vmem:[%s327_s0] sm:$0xf]  ;;  %234 = vmatpush3.bf16.msra.mxu1 %v255_v3  ;;  %v261_v10 = vld [vmem:[%s328_s3 + $0x30] sm:$0xff]   ;;  %v262_v11 = vld [vmem:[%s328_s3 + $0x38] sm:$0xff]  }
   0x4   :  { %235 = vmatprep.subr.bf16.mxu1 %v263_v0  ;;  %v259_v8 = vld [vmem:[%s328_s3 + $0x20] sm:$0xff]  }
   0x5   :  { %v207_v12 = vld [vmem:[%s329_s2] ss:$0 sm:$0xff] }
   0x6   :  { %230 = vmatmul.mubr.msk.bf16.vlgmr.msra.gmra.mrb[0].mxu0 %vm31_vm2, %v30_v4 }
   0x7   :  { %236 = vmatpush3.bf16.msra.mxu1 %v256_v5 }
   0x8   :  { %237 = vmatprep.subr.bf16.mxu1 %v263_v0 }
   0xb   :  { %238 = vmatpush3.bf16.msra.mxu1 %v257_v6 }
   0xc   :  { %239 = vmatprep.subr.bf16.mxu1 %v263_v0 }
   0xf   :  { %240 = vmatpush3.bf16.msra.mxu1 %v258_v7 }
  0x10   :  { %241 = vmatprep.subr.bf16.mxu1 %v263_v0 }
  0x13   :  { %242 = vmatpush3.bf16.msra.mxu1 %v259_v8 }
  0x14   :  { %243 = vmatprep.subr.bf16.mxu1 %v263_v0 }
  0x17   :  { %244 = vmatpush3.bf16.msra.mxu1 %v260_v9 }
  0x18   :  { %245 = vmatprep.subr.bf16.mxu1 %v263_v0 }
  0x1b   :  { %246 = vmatpush3.bf16.msra.mxu1 %v261_v10 }
  0x1c   :  { %247 = vmatprep.subr.bf16.mxu1 %v263_v0 }
  0x1f   :  { %248 = vmatpush3.bf16.msra.mxu1 %v262_v11 }
  0xd9   :  { %v73_v13 = vpop.f32.mrb[0].mxu0 }
  0xda   :  { %v92_v14 = vadd.f32 %v207_v12, %v73_v13  ;;  %v231_v15 = vpop.f32.mrb[1].mxu0 }
  0xdb   :  { %v76_v16 = vpop.f32.mrb[2].mxu0 }
  0xdc   :  { %v93_v17 = vpack.c.bf16 %v92_v14, %v92_v14  ;;  %v232_v18 = vpop.f32.mrb[3].mxu0 }
  0xde   :  { %250 = vmatmul.mubr.bf16.vlgmr.msra.gmra.mrb[0].mxu1 %v93_v17 }
 0x1b1   :  { %v192_v19 = vpop.f32.mrb[0].mxu1 }
 0x1b2   :  { %v198_v20 = vpack.c.bf16 %v192_v19, %v192_v19  ;;  %v251_v21 = vpop.f32.mrb[1].mxu1 }
 0x1b3   :  { %v195_v22 = vpop.f32.mrb[2].mxu1 }
 0x1b4   :  { %199 = vst [vmem:[%s330_s4] sm:$0xf] %v198_v20  ;;  %v252_v23 = vpop.f32.mrb[3].mxu1 }

</bundles_post_ra>
